<compile_context>
chip_gen: v6e
topology: v6e:2x2x1
jax: 0.10.0
libtpu: 0.0.40
codegen_flags: <defaults>
</compile_context>

<pallas_src>
import jax
import jax.numpy as jnp
from jax.experimental import pallas as pl
from jax.experimental.pallas import tpu as pltpu


def _broadcast_kernel(p_ref, o_ref):
    # p_ref: (1, F) flattened parameter (same block every step -> stays in VMEM)
    # o_ref: (TB, F) lane-dense output tile for this batch chunk
    o_ref[...] = jnp.broadcast_to(p_ref[...], o_ref.shape)


def _choose_block_batch(batch_size: int, row_bytes: int) -> int:
    """Pick how many batch rows to write per grid step.

    Target ~4 MiB per output tile (so 2x double-buffered output stays well
    under the default scoped VMEM limit on all of v5e / v6e / v7x), rounded to
    a multiple of 8 sublanes when tiling, or the full batch if it fits.
    """
    target_bytes = 4 * 1024 * 1024
    tb = max(1, target_bytes // max(row_bytes, 1))
    if tb >= batch_size:
        return batch_size  # single block covers the whole batch (full-dim block is legal)
    tb = max(8, (tb // 8) * 8)  # keep the sublane dim 8-aligned
    return min(tb, batch_size)


def param_state_init_forward(param: jax.Array, batch_size: int,
                             block_batch: int | None = None) -> jax.Array:
    """Broadcast param (S, D) across batch -> (batch_size, S, D) via Pallas."""
    S, D = param.shape
    F = S * D
    # Lane-dense presentation: last dim F (>=128-multiple in typical slot configs).
    p_flat = param.reshape(1, F)
    row_bytes = F * jnp.dtype(param.dtype).itemsize
    tb = block_batch if block_batch is not None else _choose_block_batch(batch_size, row_bytes)
    grid = (pl.cdiv(batch_size, tb),)

    out_flat = pl.pallas_call(
        _broadcast_kernel,
        out_shape=jax.ShapeDtypeStruct((batch_size, F), param.dtype),
        grid_spec=pltpu.PrefetchScalarGridSpec(
            num_scalar_prefetch=0,
            grid=grid,
            in_specs=[
                # Same (1, F) parameter block every step: zero input DMA after step 0.
                pl.BlockSpec((1, F), lambda i: (0, 0)),
            ],
            out_specs=pl.BlockSpec((tb, F), lambda i: (i, 0)),
        ),
        compiler_params=pltpu.CompilerParams(
            # Pure write-out, independent per batch chunk -> shard across TCs on v7x.
            dimension_semantics=("parallel",),
        ),
    )(p_flat)
    return out_flat.reshape(batch_size, S, D)


class ParamStateInit:
    """JAX/Pallas port of graphslot ParamStateInit.

    Note: ignores any conditional input (by design), just like the PyTorch module.
    """

    def __init__(self, shape, init_fn: str = "normal", key=None, dtype=jnp.float32):
        if init_fn == "normal":
            if key is None:
                key = jax.random.PRNGKey(0)
            # matches nn.init.normal_(std=1.0); deterministic given the key
            self.param = jax.random.normal(key, tuple(shape), dtype=dtype)
        elif init_fn == "zeros":
            self.param = jnp.zeros(tuple(shape), dtype=dtype)
        else:
            raise ValueError(f"Unknown init_fn: {init_fn}")
        # TODO(synk): learnable-parameter re-init on every forward (nn.init side
        # effects / autograd) is host/training machinery, not kernel work.

    def __call__(self, inputs, batch_size: int) -> jax.Array:
        del inputs  # ignored by design
        # Note: for very small outputs (few KiB) jnp.broadcast_to would beat the
        # pallas_call launch cost; we always use the kernel here for coverage.
        return param_state_init_forward(self.param, batch_size)


if __name__ == "__main__":
    # Small shapes consistent with slot-style state init: 8 slots, 32-dim hidden.
    num_slots, slot_dim = 8, 32
    batch_size = 2

    key = jax.random.PRNGKey(0)
    module = ParamStateInit(shape=(num_slots, slot_dim), init_fn="normal", key=key)

    # Case 1: tiny batch, whole batch in one lane-dense block.
    out = module(None, batch_size=batch_size)
    out = jax.block_until_ready(out)
    ref = jnp.broadcast_to(module.param[None], (batch_size, num_slots, slot_dim))
    assert out.shape == (batch_size, num_slots, slot_dim), out.shape
    assert jnp.array_equal(out, ref), "Pallas broadcast mismatch vs reference (B=2)"

    # Case 2: exercise multi-block tiling + a partial trailing block
    # (batch=20 with block_batch=8 -> grid of 3, last block masked to 4 rows).
    big_b = 20
    out2 = param_state_init_forward(module.param, big_b, block_batch=8)
    out2 = jax.block_until_ready(out2)
    ref2 = jnp.broadcast_to(module.param[None], (big_b, num_slots, slot_dim))
    assert out2.shape == (big_b, num_slots, slot_dim), out2.shape
    assert jnp.array_equal(out2, ref2), "Pallas broadcast mismatch vs reference (B=20)"

    print("KERNEL_OK")
</pallas_src>

<mosaic_0001>
module attributes {stable_mosaic.version = 11 : i64} {
  func.func @_broadcast_kernel(%arg0: i32, %arg1: memref<1x256xf32, #tpu.memory_space<vmem>>, %arg2: memref<2x256xf32, #tpu.memory_space<vmem>>) attributes {dimension_semantics = [#tpu.dimension_semantics<parallel>], iteration_bounds = array<i64: 1>, scalar_prefetch = 0 : i64, scratch_operands = 0 : i64, tpu.core_type = #tpu.core_type<tc>, window_params = [{pipeline_mode = #tpu.pipeline_mode<synchronous>, transform_indices = @transform_0, window_bounds = array<i64: 1, 256>}, {transform_indices = @transform_1, window_bounds = array<i64: 2, 256>}]} {
    %c0 = arith.constant 0 : index
    %c0_0 = arith.constant 0 : index
    %0 = vector.load %arg1[%c0, %c0_0] : memref<1x256xf32, #tpu.memory_space<vmem>>, vector<1x256xf32>
    %1 = vector.shape_cast %0 : vector<1x256xf32> to vector<1x256xf32>
    %2 = vector.broadcast %1 : vector<1x256xf32> to vector<2x256xf32>
    %c0_1 = arith.constant 0 : index
    %c0_2 = arith.constant 0 : index
    %3 = vector.load %arg2[%c0_1, %c0_2] : memref<2x256xf32, #tpu.memory_space<vmem>>, vector<2x256xf32>
    tpu.vector_store %arg2[%c0_1, %c0_2], %2 {strides = array<i32>} : memref<2x256xf32, #tpu.memory_space<vmem>>, vector<2x256xf32>,
    return
  }
  func.func @transform_0(%arg0: i32) -> (i32, i32) {
    %c0_i32 = arith.constant 0 : i32
    %c0_i32_0 = arith.constant 0 : i32
    %c0_i32_1 = arith.constant 0 : i32
    return %c0_i32, %c0_i32_0 : i32, i32
  }
  func.func @transform_1(%arg0: i32) -> (i32, i32) {
    %c0_i32 = arith.constant 0 : i32
    %c0_i32_0 = arith.constant 0 : i32
    return %arg0, %c0_i32 : i32, i32
  }
}

</mosaic_0001>

<bundles_post_ra>
// kernel: tpu_custom_call.1
= control target key start
LH: loop header
LB: loop body
LE: loop exit
PB: predicated region body
PF: predicated region fallthrough
CT: control target
= control target key end

     0   :  { %6 = vsyncpa [#allocation3], 0  ;;  %s121_s0 = inlined_call_operand.hbm [shape: f32[1,256], index: 0, kind: input, shape index: {}]   ;;  %s122_s1 = inlined_call_operand.hbm [shape: f32[2,256], index: 1, kind: output, shape index: {}]  }
   0x1   :  { %7 = vsyncpa [#allocation4], 0  ;;  %s103_s6 = smov [#allocation2]  }
   0x2   :  { %s14_s7 = sshll.u32 %s103_s6, 4  ;;  %s15_s7 = int_to_ptr.vmem [resolvable:$true] %s14_s7 }
   0x3   :  { %s67_s8 = scalar_lea.vmem %s15_s7, 32  ;;  %p72_p1 = scmp.lt.s32.totalorder %s15_s7, %s15_s7 }
   0x4   :  { %p68_p0 = scmp.ne.s32.totalorder %s15_s7, %s67_s8  ;;  %p73_p2 = scmp.lt.s32.totalorder %s67_s8, %s67_s8 }
   0x6   :  { %p74_p3 = por %p73_p2, %p72_p1 }
   0x8   :  { %p75_p4 = pnand %p74_p3, %p68_p0 }
   0xa   :  { %78 = shalt.err (!%p75_p4)
}
   0xb   :  { %17 = dma.hbm_to_vmem [thread:$0]  %s121_s0, 32, %s15_s7, [#allocation3]  }
   0xc   :  { %99 = dma.done.wait [#allocation3], 32  }
   0xd   :  { %100 = vsyncadd [#allocation3], 4294967264  ;;  %v23_v0 = vlaneseq  ;;  %v21_v4 = vld [vmem:[#allocation2] sm:$0x3]  ;;  %s104_s11 = smov [#allocation5]  }
   0xe   :  { %s47_s12 = sshll.u32 %s104_s11, 4  ;;  %s48_s12 = int_to_ptr.vmem [resolvable:$true] %s47_s12 }
   0xf   :  { %v24_v1 = vshrl.u32 %v23_v0, 7  ;;  %s79_s13 = scalar_lea.vmem %s48_s12, 64  ;;  %p84_p6 = scmp.lt.s32.totalorder %s48_s12, %s48_s12 }
  0x10   :  { %p80_p5 = scmp.ne.s32.totalorder %s48_s12, %s79_s13  ;;  %p85_p7 = scmp.lt.s32.totalorder %s79_s13, %s79_s13 }
  0x11   :  { %v25_v2 = vsub.s32 0, %v24_v1  ;;  %v29_v3 = vsub.s32 1, %v24_v1 }
  0x12   :  { %p86_p8 = por %p85_p7, %p84_p6 }
  0x13   :  { %v26_v5 = vrot.slane %v21_v4, %v25_v2  ;;  %v30_v6 = vrot.slane %v21_v4, %v29_v3 }
  0x14   :  { %p87_p9 = pnand %p86_p8, %p80_p5 }
  0x15   :  { %v31_v7 = vcombine.low %v26_v5, %v30_v6 }
  0x17   :  { %56 = vst.sshfl [vmem:[#allocation5] sm:$0x33 pattern:$0x76325410] %v31_v7 }
  0x18   :  { %90 = shalt.err (!%p87_p9)
}
  0x19   :  { %50 = dma.vmem_to_hbm [thread:$0]  %s48_s12, 64, %s122_s1, [#allocation4]  }
  0x1a   :  { %101 = dma.done.wait [#allocation4], 64  }
  0x1b   :  { %102 = vsyncadd [#allocation4], 4294967232 }
  0x1c   :  { %54 = vsyncpa [#allocation3], 1 }
  0x1d   :  { %55 = vsyncpa [#allocation4], 1 }

</bundles_post_ra>
